<compile_context>
chip_gen: v7x
topology: tpu7x:2x2x1
jax: 0.10.0
libtpu: 0.0.40
codegen_flags: <defaults>
</compile_context>

<pallas_src>
import functools
import math

import jax
import jax.numpy as jnp
from jax import lax
from jax.experimental import pallas as pl
from jax.experimental.pallas import tpu as pltpu


def _mha_kernel(x_ref, wqkv_ref, bqkv_ref, wo_ref, bo_ref, o_ref, vals_ref,
                *, head_dim, heads_per_group):
    G = heads_per_group
    hd = head_dim
    g = pl.program_id(1)
    cdt = x_ref.dtype

    x = x_ref[0]                                  # (S, D)  compute dtype

    wq = wqkv_ref[0, 0]                           # (D, G*hd)  (1/sqrt(hd) folded in)
    wk = wqkv_ref[1, 0]
    wv = wqkv_ref[2, 0]
    bq = bqkv_ref[0, 0]                           # (1, G*hd)  f32
    bk = bqkv_ref[1, 0]
    bv = bqkv_ref[2, 0]

    # Grouped QKV projection: wide MXU matmuls with f32 accumulation.
    q = (jnp.dot(x, wq, preferred_element_type=jnp.float32) + bq).astype(cdt)
    k = (jnp.dot(x, wk, preferred_element_type=jnp.float32) + bk).astype(cdt)
    v = (jnp.dot(x, wv, preferred_element_type=jnp.float32) + bv).astype(cdt)

    vals = []
    for i in range(G):                            # static unroll over heads in group
        lo = i * hd
        qi = q[:, lo:lo + hd]
        ki = k[:, lo:lo + hd]
        vi = v[:, lo:lo + hd]
        # logits = q @ k^T via dot_general (contract dim 1 vs 1): no transpose.
        logits = lax.dot_general(qi, ki, (((1,), (1,)), ((), ())),
                                 preferred_element_type=jnp.float32)   # (S, S) f32
        # Numerically-stable softmax; normalization deferred to after the AV dot.
        m = jnp.max(logits, axis=-1, keepdims=True)
        p = jnp.exp(logits - m)
        denom = jnp.sum(p, axis=-1, keepdims=True)
        pv = jnp.dot(p.astype(cdt), vi, preferred_element_type=jnp.float32)  # (S, hd)
        vals.append((pv * pl.reciprocal(denom, approx=True)).astype(cdt))

    # Lane-dense store of this group's head-concat (S, G*hd) slab.
    vals_ref[g] = jnp.concatenate(vals, axis=-1)

    @pl.when(g == pl.num_programs(1) - 1)
    def _finalize():
        GH = vals_ref.shape[0]
        acc = jnp.dot(vals_ref[0], wo_ref[0], preferred_element_type=jnp.float32)
        for gg in range(1, GH):                   # static; contraction K = G*hd per dot
            acc += jnp.dot(vals_ref[gg], wo_ref[gg],
                           preferred_element_type=jnp.float32)
        o_ref[0] = (acc + bo_ref[...]).astype(o_ref.dtype)

    # TODO(synk): optional `mask` and `return_attention=True` paths of the module
    # are not implemented (forward defaults: mask=None, return_attention=False).
    # TODO(synk): for long sequences (S >~ 2k, especially v7x's 64 MiB VMEM) add a
    # query-tile grid axis with online softmax so live VMEM is O(tq*S), not O(S*S).


def _pick_heads_per_group(num_heads, head_dim, target_lanes):
    """Largest divisor G of num_heads with G*head_dim <= target_lanes (>=1)."""
    best = 1
    for g in range(1, num_heads + 1):
        if num_heads % g == 0 and g * head_dim <= target_lanes:
            best = g
    return best


def multihead_attention(x, w_qkv, b_qkv, w_o, b_o, num_heads,
                        *, compute_dtype=jnp.bfloat16, mxu_target_lanes=256):
    """Forward of the T-GCN MultiheadAttention module (mask=None).

    Parameters use the PyTorch nn.Linear layout:
      x     : (B, S, D)
      w_qkv : (3E, D)   qkv_proj.weight   (y = x @ W.T + b)
      b_qkv : (3E,)     qkv_proj.bias
      w_o   : (E, E)    o_proj.weight
      b_o   : (E,)      o_proj.bias
    Returns (B, S, E).
    """
    B, S, D = x.shape
    E = w_o.shape[0]
    assert w_qkv.shape[0] == 3 * E and E % num_heads == 0
    H = num_heads
    hd = E // H
    # Group heads so the grouped matmul width G*hd fills the MXU
    # (256 for v6e/v7x; use mxu_target_lanes=128 on v5e).
    G = _pick_heads_per_group(H, hd, mxu_target_lanes)
    GH = H // G
    scale = 1.0 / math.sqrt(hd)

    # ---- free XLA-side re-packing into grouped, lane-aligned weight slabs ----
    # Module qkv feature layout: f = h*3*hd + c*hd + j (head-major [q_h|k_h|v_h]).
    w_heads = jnp.transpose(w_qkv.T.reshape(D, H, 3, hd), (2, 1, 0, 3))   # (3,H,D,hd)
    w_heads = w_heads.at[0].multiply(scale)          # fold 1/sqrt(hd) into q weights
    b_heads = jnp.transpose(b_qkv.reshape(H, 3, hd), (1, 0, 2))           # (3,H,hd)
    b_heads = b_heads.at[0].multiply(scale)
    w_g = (w_heads.reshape(3, GH, G, D, hd)
                  .transpose(0, 1, 3, 2, 4)
                  .reshape(3, GH, D, G * hd))                              # (3,GH,D,G*hd)
    b_g = b_heads.reshape(3, GH, 1, G * hd).astype(jnp.float32)            # (3,GH,1,G*hd)
    w_o_g = w_o.T.reshape(GH, G * hd, E)                                   # (GH,G*hd,E)
    b_o2 = b_o.reshape(1, E).astype(jnp.float32)

    # bf16 matmul inputs; accumulation and softmax stay f32 inside the kernel.
    xc = x.astype(compute_dtype)
    w_g = w_g.astype(compute_dtype)
    w_o_g = w_o_g.astype(compute_dtype)

    kernel = functools.partial(_mha_kernel, head_dim=hd, heads_per_group=G)

    cs = jnp.dtype(compute_dtype).itemsize
    outs = x.dtype.itemsize

    # Explicit scoped-VMEM budget from the real per-step footprint (double-buffered
    # DMA blocks + scratch + live intermediates), clamped to sane bounds.
    dma_bytes = 2 * (S * D * cs + 3 * D * G * hd * cs + 3 * G * hd * 4
                     + E * E * cs + E * 4 + S * E * outs)
    scratch_bytes = S * E * cs
    live_bytes = (3 * S * G * hd * (4 + cs)        # q, k, v (f32 + cast)
                  + 2 * S * S * 4 + S * S * cs     # logits, p, p cast
                  + S * hd * 4 + S * E * 4)        # pv, finalize accumulator
    vmem_limit = int(min(max(1.5 * (dma_bytes + scratch_bytes + live_bytes),
                             32 * 1024 * 1024), 128 * 1024 * 1024))

    cost = pl.CostEstimate(
        flops=(2 * B * S * D * 3 * E              # qkv projection
               + 2 * B * H * S * S * hd * 2       # q@k^T and attn@v
               + 2 * B * S * E * E),              # output projection
        transcendentals=B * H * S * S,            # softmax exp
        bytes_accessed=((xc.size + w_g.size + w_o_g.size) * cs
                        + (b_g.size + b_o2.size) * 4
                        + B * S * E * outs))

    return pl.pallas_call(
        kernel,
        out_shape=jax.ShapeDtypeStruct((B, S, E), x.dtype),
        grid=(B, GH),
        in_specs=[
            pl.BlockSpec((1, S, D), lambda b, g: (b, 0, 0)),             # x (resident per b)
            pl.BlockSpec((3, 1, D, G * hd), lambda b, g: (0, g, 0, 0)),  # grouped qkv weights
            pl.BlockSpec((3, 1, 1, G * hd), lambda b, g: (0, g, 0, 0)),  # grouped qkv bias
            pl.BlockSpec((GH, G * hd, E), lambda b, g: (0, 0, 0)),       # o-proj weights (resident)
            pl.BlockSpec((1, E), lambda b, g: (0, 0)),                   # o-proj bias
        ],
        out_specs=pl.BlockSpec((1, S, E), lambda b, g: (b, 0, 0)),
        scratch_shapes=[pltpu.VMEM((GH, S, G * hd), compute_dtype)],
        compiler_params=pltpu.CompilerParams(
            dimension_semantics=("parallel", "arbitrary"),
            vmem_limit_bytes=vmem_limit),
        cost_estimate=cost,
    )(xc, w_g, b_g, w_o_g, b_o2)


def xavier_uniform(key, fan_in, fan_out, shape):
    a = math.sqrt(6.0 / (fan_in + fan_out))
    return jax.random.uniform(key, shape, jnp.float32, minval=-a, maxval=a)


def reference_mha(x, w_qkv, b_qkv, w_o, b_o, num_heads):
    """Pure-JAX f32 mirror of the PyTorch module's forward (mask=None)."""
    B, S, D = x.shape
    E = w_o.shape[0]
    hd = E // num_heads
    qkv = jnp.einsum("bsd,ed->bse", x, w_qkv) + b_qkv            # Linear: x @ W.T + b
    qkv = qkv.reshape(B, S, num_heads, 3 * hd).transpose(0, 2, 1, 3)
    q, k, v = jnp.split(qkv, 3, axis=-1)
    logits = jnp.einsum("bhqd,bhkd->bhqk", q, k) / math.sqrt(hd)
    attn = jax.nn.softmax(logits, axis=-1)
    vals = jnp.einsum("bhqk,bhkd->bhqd", attn, v)
    vals = vals.transpose(0, 2, 1, 3).reshape(B, S, E)
    return jnp.einsum("bse,fe->bsf", vals, w_o) + b_o


if __name__ == "__main__":
    B, S = 2, 8
    input_dim = 16
    embed_dim = 32
    num_heads = 4

    key = jax.random.PRNGKey(0)
    kx, kw1, kb1, kw2, kb2 = jax.random.split(key, 5)

    x = jax.random.normal(kx, (B, S, input_dim), jnp.float32)

    # qkv_proj / o_proj xavier-uniform weights; small nonzero biases to exercise
    # the bias path (the module inits them to 0).
    w_qkv = xavier_uniform(kw1, input_dim, 3 * embed_dim,
                           (3 * embed_dim, input_dim))
    b_qkv = 0.1 * jax.random.normal(kb1, (3 * embed_dim,), jnp.float32)
    w_o = xavier_uniform(kw2, embed_dim, embed_dim, (embed_dim, embed_dim))
    b_o = 0.1 * jax.random.normal(kb2, (embed_dim,), jnp.float32)

    ref = reference_mha(x, w_qkv, b_qkv, w_o, b_o, num_heads)

    # f32 compute-dtype path (tolerance covers default matmul precision and the
    # approximate-reciprocal softmax normalization).
    out_f32 = multihead_attention(x, w_qkv, b_qkv, w_o, b_o, num_heads,
                                  compute_dtype=jnp.float32)
    out_f32 = jax.block_until_ready(out_f32)
    assert out_f32.shape == (B, S, embed_dim)
    assert jnp.allclose(out_f32, ref, atol=2e-2, rtol=2e-2), "f32 kernel mismatch"

    # Default bf16 matmul-input path (f32 accumulation) — the performance config.
    out_bf16 = multihead_attention(x, w_qkv, b_qkv, w_o, b_o, num_heads)
    out_bf16 = jax.block_until_ready(out_bf16)
    assert out_bf16.shape == (B, S, embed_dim)
    assert jnp.allclose(out_bf16, ref, atol=5e-2, rtol=5e-2), "bf16 kernel mismatch"

    print("KERNEL_OK")
</pallas_src>

<mosaic_0001>
module attributes {stable_mosaic.version = 11 : i64} {
  func.func @_mha_kernel(%arg0: i32, %arg1: i32, %arg2: memref<1x8x16xf32, #tpu.memory_space<vmem>>, %arg3: memref<3x1x16x32xf32, #tpu.memory_space<vmem>>, %arg4: memref<3x1x1x32xf32, #tpu.memory_space<vmem>>, %arg5: memref<1x32x32xf32, #tpu.memory_space<vmem>>, %arg6: memref<1x32xf32, #tpu.memory_space<vmem>>, %arg7: memref<1x8x32xf32, #tpu.memory_space<vmem>>, %arg8: memref<1x8x32xf32, #tpu.memory_space<vmem>>) attributes {dimension_semantics = [#tpu.dimension_semantics<parallel>, #tpu.dimension_semantics<arbitrary>], iteration_bounds = array<i64: 2, 1>, scalar_prefetch = 0 : i64, scratch_operands = 1 : i64, tpu.core_type = #tpu.core_type<tc>, window_params = [{transform_indices = @transform_0, window_bounds = array<i64: 1, 8, 16>}, {transform_indices = @transform_1, window_bounds = array<i64: 3, 1, 16, 32>}, {transform_indices = @transform_2, window_bounds = array<i64: 3, 1, 1, 32>}, {pipeline_mode = #tpu.pipeline_mode<synchronous>, transform_indices = @transform_3, window_bounds = array<i64: 1, 32, 32>}, {pipeline_mode = #tpu.pipeline_mode<synchronous>, transform_indices = @transform_4, window_bounds = array<i64: 1, 32>}, {transform_indices = @transform_5, window_bounds = array<i64: 1, 8, 32>}]} {
    %c0 = arith.constant 0 : index
    %c0_0 = arith.constant 0 : index
    %c0_1 = arith.constant 0 : index
    %0 = vector.load %arg2[%c0, %c0_0, %c0_1] : memref<1x8x16xf32, #tpu.memory_space<vmem>>, vector<1x8x16xf32>
    %1 = vector.shape_cast %0 : vector<1x8x16xf32> to vector<8x16xf32>
    %c0_2 = arith.constant 0 : index
    %c0_3 = arith.constant 0 : index
    %c0_4 = arith.constant 0 : index
    %c0_5 = arith.constant 0 : index
    %2 = vector.load %arg3[%c0_2, %c0_3, %c0_4, %c0_5] : memref<3x1x16x32xf32, #tpu.memory_space<vmem>>, vector<1x1x16x32xf32>
    %3 = vector.shape_cast %2 : vector<1x1x16x32xf32> to vector<16x32xf32>
    %c1 = arith.constant 1 : index
    %c0_6 = arith.constant 0 : index
    %c0_7 = arith.constant 0 : index
    %c0_8 = arith.constant 0 : index
    %4 = vector.load %arg3[%c1, %c0_6, %c0_7, %c0_8] : memref<3x1x16x32xf32, #tpu.memory_space<vmem>>, vector<1x1x16x32xf32>
    %5 = vector.shape_cast %4 : vector<1x1x16x32xf32> to vector<16x32xf32>
    %c2 = arith.constant 2 : index
    %c0_9 = arith.constant 0 : index
    %c0_10 = arith.constant 0 : index
    %c0_11 = arith.constant 0 : index
    %6 = vector.load %arg3[%c2, %c0_9, %c0_10, %c0_11] : memref<3x1x16x32xf32, #tpu.memory_space<vmem>>, vector<1x1x16x32xf32>
    %7 = vector.shape_cast %6 : vector<1x1x16x32xf32> to vector<16x32xf32>
    %c0_12 = arith.constant 0 : index
    %c0_13 = arith.constant 0 : index
    %c0_14 = arith.constant 0 : index
    %c0_15 = arith.constant 0 : index
    %8 = vector.load %arg4[%c0_12, %c0_13, %c0_14, %c0_15] : memref<3x1x1x32xf32, #tpu.memory_space<vmem>>, vector<1x1x1x32xf32>
    %9 = vector.shape_cast %8 : vector<1x1x1x32xf32> to vector<1x32xf32>
    %c1_16 = arith.constant 1 : index
    %c0_17 = arith.constant 0 : index
    %c0_18 = arith.constant 0 : index
    %c0_19 = arith.constant 0 : index
    %10 = vector.load %arg4[%c1_16, %c0_17, %c0_18, %c0_19] : memref<3x1x1x32xf32, #tpu.memory_space<vmem>>, vector<1x1x1x32xf32>
    %11 = vector.shape_cast %10 : vector<1x1x1x32xf32> to vector<1x32xf32>
    %c2_20 = arith.constant 2 : index
    %c0_21 = arith.constant 0 : index
    %c0_22 = arith.constant 0 : index
    %c0_23 = arith.constant 0 : index
    %12 = vector.load %arg4[%c2_20, %c0_21, %c0_22, %c0_23] : memref<3x1x1x32xf32, #tpu.memory_space<vmem>>, vector<1x1x1x32xf32>
    %13 = vector.shape_cast %12 : vector<1x1x1x32xf32> to vector<1x32xf32>
    %cst = arith.constant dense<0.000000e+00> : vector<8x32xf32>
    %14 = tpu.matmul %1, %3, %cst {dimension_numbers = #tpu.dot_dimension_numbers<[1], [0], [0], [1], [0, 0, 1, 1], [], []>} : vector<8x16xf32>, vector<16x32xf32>, vector<8x32xf32> -> vector<8x32xf32>
    %15 = vector.broadcast %9 : vector<1x32xf32> to vector<8x32xf32>
    %16 = arith.addf %14, %15 : vector<8x32xf32>
    %cst_24 = arith.constant dense<0.000000e+00> : vector<8x32xf32>
    %17 = tpu.matmul %1, %5, %cst_24 {dimension_numbers = #tpu.dot_dimension_numbers<[1], [0], [0], [1], [0, 0, 1, 1], [], []>} : vector<8x16xf32>, vector<16x32xf32>, vector<8x32xf32> -> vector<8x32xf32>
    %18 = vector.broadcast %11 : vector<1x32xf32> to vector<8x32xf32>
    %19 = arith.addf %17, %18 : vector<8x32xf32>
    %cst_25 = arith.constant dense<0.000000e+00> : vector<8x32xf32>
    %20 = tpu.matmul %1, %7, %cst_25 {dimension_numbers = #tpu.dot_dimension_numbers<[1], [0], [0], [1], [0, 0, 1, 1], [], []>} : vector<8x16xf32>, vector<16x32xf32>, vector<8x32xf32> -> vector<8x32xf32>
    %21 = vector.broadcast %13 : vector<1x32xf32> to vector<8x32xf32>
    %22 = arith.addf %20, %21 : vector<8x32xf32>
    %23 = vector.extract_strided_slice %16 {offsets = [0, 0], sizes = [8, 8], strides = [1, 1]} : vector<8x32xf32> to vector<8x8xf32>
    %24 = vector.extract_strided_slice %19 {offsets = [0, 0], sizes = [8, 8], strides = [1, 1]} : vector<8x32xf32> to vector<8x8xf32>
    %25 = vector.extract_strided_slice %22 {offsets = [0, 0], sizes = [8, 8], strides = [1, 1]} : vector<8x32xf32> to vector<8x8xf32>
    %cst_26 = arith.constant dense<0.000000e+00> : vector<8x8xf32>
    %26 = tpu.matmul %23, %24, %cst_26 {dimension_numbers = #tpu.dot_dimension_numbers<[1], [1], [0], [0], [0, 0, 1, 0], [], []>} : vector<8x8xf32>, vector<8x8xf32>, vector<8x8xf32> -> vector<8x8xf32>
    %cst_27 = arith.constant dense<0xFF800000> : vector<8xf32>
    %27 = vector.multi_reduction <maximumf>, %26, %cst_27 [1] : vector<8x8xf32> to vector<8xf32>
    %28 = vector.shape_cast %27 : vector<8xf32> to vector<8x1xf32>
    %29 = vector.broadcast %28 : vector<8x1xf32> to vector<8x8xf32>
    %30 = arith.subf %26, %29 : vector<8x8xf32>
    %31 = math.exp %30 : vector<8x8xf32>
    %cst_28 = arith.constant dense<0.000000e+00> : vector<8xf32>
    %32 = vector.multi_reduction <add>, %31, %cst_28 [1] : vector<8x8xf32> to vector<8xf32>
    %33 = vector.shape_cast %32 : vector<8xf32> to vector<8x1xf32>
    %cst_29 = arith.constant dense<0.000000e+00> : vector<8x8xf32>
    %34 = tpu.matmul %31, %25, %cst_29 {dimension_numbers = #tpu.dot_dimension_numbers<[1], [0], [0], [1], [0, 0, 1, 1], [], []>} : vector<8x8xf32>, vector<8x8xf32>, vector<8x8xf32> -> vector<8x8xf32>
    %35 = tpu.reciprocal %33 {approx = true} : vector<8x1xf32> -> vector<8x1xf32>
    %36 = vector.broadcast %35 : vector<8x1xf32> to vector<8x8xf32>
    %37 = arith.mulf %34, %36 : vector<8x8xf32>
    %38 = vector.extract_strided_slice %16 {offsets = [0, 8], sizes = [8, 8], strides = [1, 1]} : vector<8x32xf32> to vector<8x8xf32>
    %39 = vector.extract_strided_slice %19 {offsets = [0, 8], sizes = [8, 8], strides = [1, 1]} : vector<8x32xf32> to vector<8x8xf32>
    %40 = vector.extract_strided_slice %22 {offsets = [0, 8], sizes = [8, 8], strides = [1, 1]} : vector<8x32xf32> to vector<8x8xf32>
    %cst_30 = arith.constant dense<0.000000e+00> : vector<8x8xf32>
    %41 = tpu.matmul %38, %39, %cst_30 {dimension_numbers = #tpu.dot_dimension_numbers<[1], [1], [0], [0], [0, 0, 1, 0], [], []>} : vector<8x8xf32>, vector<8x8xf32>, vector<8x8xf32> -> vector<8x8xf32>
    %cst_31 = arith.constant dense<0xFF800000> : vector<8xf32>
    %42 = vector.multi_reduction <maximumf>, %41, %cst_31 [1] : vector<8x8xf32> to vector<8xf32>
    %43 = vector.shape_cast %42 : vector<8xf32> to vector<8x1xf32>
    %44 = vector.broadcast %43 : vector<8x1xf32> to vector<8x8xf32>
    %45 = arith.subf %41, %44 : vector<8x8xf32>
    %46 = math.exp %45 : vector<8x8xf32>
    %cst_32 = arith.constant dense<0.000000e+00> : vector<8xf32>
    %47 = vector.multi_reduction <add>, %46, %cst_32 [1] : vector<8x8xf32> to vector<8xf32>
    %48 = vector.shape_cast %47 : vector<8xf32> to vector<8x1xf32>
    %cst_33 = arith.constant dense<0.000000e+00> : vector<8x8xf32>
    %49 = tpu.matmul %46, %40, %cst_33 {dimension_numbers = #tpu.dot_dimension_numbers<[1], [0], [0], [1], [0, 0, 1, 1], [], []>} : vector<8x8xf32>, vector<8x8xf32>, vector<8x8xf32> -> vector<8x8xf32>
    %50 = tpu.reciprocal %48 {approx = true} : vector<8x1xf32> -> vector<8x1xf32>
    %51 = vector.broadcast %50 : vector<8x1xf32> to vector<8x8xf32>
    %52 = arith.mulf %49, %51 : vector<8x8xf32>
    %53 = vector.extract_strided_slice %16 {offsets = [0, 16], sizes = [8, 8], strides = [1, 1]} : vector<8x32xf32> to vector<8x8xf32>
    %54 = vector.extract_strided_slice %19 {offsets = [0, 16], sizes = [8, 8], strides = [1, 1]} : vector<8x32xf32> to vector<8x8xf32>
    %55 = vector.extract_strided_slice %22 {offsets = [0, 16], sizes = [8, 8], strides = [1, 1]} : vector<8x32xf32> to vector<8x8xf32>
    %cst_34 = arith.constant dense<0.000000e+00> : vector<8x8xf32>
    %56 = tpu.matmul %53, %54, %cst_34 {dimension_numbers = #tpu.dot_dimension_numbers<[1], [1], [0], [0], [0, 0, 1, 0], [], []>} : vector<8x8xf32>, vector<8x8xf32>, vector<8x8xf32> -> vector<8x8xf32>
    %cst_35 = arith.constant dense<0xFF800000> : vector<8xf32>
    %57 = vector.multi_reduction <maximumf>, %56, %cst_35 [1] : vector<8x8xf32> to vector<8xf32>
    %58 = vector.shape_cast %57 : vector<8xf32> to vector<8x1xf32>
    %59 = vector.broadcast %58 : vector<8x1xf32> to vector<8x8xf32>
    %60 = arith.subf %56, %59 : vector<8x8xf32>
    %61 = math.exp %60 : vector<8x8xf32>
    %cst_36 = arith.constant dense<0.000000e+00> : vector<8xf32>
    %62 = vector.multi_reduction <add>, %61, %cst_36 [1] : vector<8x8xf32> to vector<8xf32>
    %63 = vector.shape_cast %62 : vector<8xf32> to vector<8x1xf32>
    %cst_37 = arith.constant dense<0.000000e+00> : vector<8x8xf32>
    %64 = tpu.matmul %61, %55, %cst_37 {dimension_numbers = #tpu.dot_dimension_numbers<[1], [0], [0], [1], [0, 0, 1, 1], [], []>} : vector<8x8xf32>, vector<8x8xf32>, vector<8x8xf32> -> vector<8x8xf32>
    %65 = tpu.reciprocal %63 {approx = true} : vector<8x1xf32> -> vector<8x1xf32>
    %66 = vector.broadcast %65 : vector<8x1xf32> to vector<8x8xf32>
    %67 = arith.mulf %64, %66 : vector<8x8xf32>
    %68 = vector.extract_strided_slice %16 {offsets = [0, 24], sizes = [8, 8], strides = [1, 1]} : vector<8x32xf32> to vector<8x8xf32>
    %69 = vector.extract_strided_slice %19 {offsets = [0, 24], sizes = [8, 8], strides = [1, 1]} : vector<8x32xf32> to vector<8x8xf32>
    %70 = vector.extract_strided_slice %22 {offsets = [0, 24], sizes = [8, 8], strides = [1, 1]} : vector<8x32xf32> to vector<8x8xf32>
    %cst_38 = arith.constant dense<0.000000e+00> : vector<8x8xf32>
    %71 = tpu.matmul %68, %69, %cst_38 {dimension_numbers = #tpu.dot_dimension_numbers<[1], [1], [0], [0], [0, 0, 1, 0], [], []>} : vector<8x8xf32>, vector<8x8xf32>, vector<8x8xf32> -> vector<8x8xf32>
    %cst_39 = arith.constant dense<0xFF800000> : vector<8xf32>
    %72 = vector.multi_reduction <maximumf>, %71, %cst_39 [1] : vector<8x8xf32> to vector<8xf32>
    %73 = vector.shape_cast %72 : vector<8xf32> to vector<8x1xf32>
    %74 = vector.broadcast %73 : vector<8x1xf32> to vector<8x8xf32>
    %75 = arith.subf %71, %74 : vector<8x8xf32>
    %76 = math.exp %75 : vector<8x8xf32>
    %cst_40 = arith.constant dense<0.000000e+00> : vector<8xf32>
    %77 = vector.multi_reduction <add>, %76, %cst_40 [1] : vector<8x8xf32> to vector<8xf32>
    %78 = vector.shape_cast %77 : vector<8xf32> to vector<8x1xf32>
    %cst_41 = arith.constant dense<0.000000e+00> : vector<8x8xf32>
    %79 = tpu.matmul %76, %70, %cst_41 {dimension_numbers = #tpu.dot_dimension_numbers<[1], [0], [0], [1], [0, 0, 1, 1], [], []>} : vector<8x8xf32>, vector<8x8xf32>, vector<8x8xf32> -> vector<8x8xf32>
    %80 = tpu.reciprocal %78 {approx = true} : vector<8x1xf32> -> vector<8x1xf32>
    %81 = vector.broadcast %80 : vector<8x1xf32> to vector<8x8xf32>
    %82 = arith.mulf %79, %81 : vector<8x8xf32>
    %83 = tpu.concatenate %37, %52, %67, %82 in 1 : vector<8x8xf32>, vector<8x8xf32>, vector<8x8xf32>, vector<8x8xf32> -> vector<8x32xf32>
    %84 = arith.index_cast %arg1 : i32 to index
    %c0_42 = arith.constant 0 : index
    %c0_43 = arith.constant 0 : index
    %85 = vector.load %arg8[%84, %c0_42, %c0_43] : memref<1x8x32xf32, #tpu.memory_space<vmem>>, vector<1x8x32xf32>
    %86 = vector.shape_cast %85 : vector<1x8x32xf32> to vector<8x32xf32>
    %87 = vector.shape_cast %83 : vector<8x32xf32> to vector<1x8x32xf32>
    tpu.vector_store %arg8[%84, %c0_42, %c0_43], %87 {strides = array<i32>} : memref<1x8x32xf32, #tpu.memory_space<vmem>>, vector<1x8x32xf32>,
    %c0_i32 = arith.constant 0 : i32
    %88 = arith.cmpi eq, %arg1, %c0_i32 : i32
    %89 = arith.extui %88 : i1 to i32
    %c0_i32_44 = arith.constant 0 : i32
    %90 = arith.cmpi ne, %89, %c0_i32_44 : i32
    scf.if %90 {
      %c0_45 = arith.constant 0 : index
      %c0_46 = arith.constant 0 : index
      %c0_47 = arith.constant 0 : index
      %91 = vector.load %arg8[%c0_45, %c0_46, %c0_47] : memref<1x8x32xf32, #tpu.memory_space<vmem>>, vector<1x8x32xf32>
      %92 = vector.shape_cast %91 : vector<1x8x32xf32> to vector<8x32xf32>
      %c0_48 = arith.constant 0 : index
      %c0_49 = arith.constant 0 : index
      %c0_50 = arith.constant 0 : index
      %93 = vector.load %arg5[%c0_48, %c0_49, %c0_50] : memref<1x32x32xf32, #tpu.memory_space<vmem>>, vector<1x32x32xf32>
      %94 = vector.shape_cast %93 : vector<1x32x32xf32> to vector<32x32xf32>
      %cst_51 = arith.constant dense<0.000000e+00> : vector<8x32xf32>
      %95 = tpu.matmul %92, %94, %cst_51 {dimension_numbers = #tpu.dot_dimension_numbers<[1], [0], [0], [1], [0, 0, 1, 1], [], []>} : vector<8x32xf32>, vector<32x32xf32>, vector<8x32xf32> -> vector<8x32xf32>
      %c0_52 = arith.constant 0 : index
      %c0_53 = arith.constant 0 : index
      %96 = vector.load %arg6[%c0_52, %c0_53] : memref<1x32xf32, #tpu.memory_space<vmem>>, vector<1x32xf32>
      %97 = vector.broadcast %96 : vector<1x32xf32> to vector<8x32xf32>
      %98 = arith.addf %95, %97 : vector<8x32xf32>
      %c0_54 = arith.constant 0 : index
      %c0_55 = arith.constant 0 : index
      %c0_56 = arith.constant 0 : index
      %99 = vector.load %arg7[%c0_54, %c0_55, %c0_56] : memref<1x8x32xf32, #tpu.memory_space<vmem>>, vector<1x8x32xf32>
      %100 = vector.shape_cast %99 : vector<1x8x32xf32> to vector<8x32xf32>
      %101 = vector.shape_cast %98 : vector<8x32xf32> to vector<1x8x32xf32>
      tpu.vector_store %arg7[%c0_54, %c0_55, %c0_56], %101 {strides = array<i32>} : memref<1x8x32xf32, #tpu.memory_space<vmem>>, vector<1x8x32xf32>,
    } else {
    }
    return
  }
  func.func @transform_0(%arg0: i32, %arg1: i32) -> (i32, i32, i32) {
    %c0_i32 = arith.constant 0 : i32
    %c0_i32_0 = arith.constant 0 : i32
    %c0_i32_1 = arith.constant 0 : i32
    return %arg0, %c0_i32, %c0_i32_0 : i32, i32, i32
  }
  func.func @transform_1(%arg0: i32, %arg1: i32) -> (i32, i32, i32, i32) {
    %c0_i32 = arith.constant 0 : i32
    %c0_i32_0 = arith.constant 0 : i32
    %c0_i32_1 = arith.constant 0 : i32
    %c0_i32_2 = arith.constant 0 : i32
    return %c0_i32, %arg1, %c0_i32_0, %c0_i32_1 : i32, i32, i32, i32
  }
  func.func @transform_2(%arg0: i32, %arg1: i32) -> (i32, i32, i32, i32) {
    %c0_i32 = arith.constant 0 : i32
    %c0_i32_0 = arith.constant 0 : i32
    %c0_i32_1 = arith.constant 0 : i32
    %c0_i32_2 = arith.constant 0 : i32
    return %c0_i32, %arg1, %c0_i32_0, %c0_i32_1 : i32, i32, i32, i32
  }
  func.func @transform_3(%arg0: i32, %arg1: i32) -> (i32, i32, i32) {
    %c0_i32 = arith.constant 0 : i32
    %c0_i32_0 = arith.constant 0 : i32
    %c0_i32_1 = arith.constant 0 : i32
    %c0_i32_2 = arith.constant 0 : i32
    return %c0_i32, %c0_i32_0, %c0_i32_1 : i32, i32, i32
  }
  func.func @transform_4(%arg0: i32, %arg1: i32) -> (i32, i32) {
    %c0_i32 = arith.constant 0 : i32
    %c0_i32_0 = arith.constant 0 : i32
    %c0_i32_1 = arith.constant 0 : i32
    return %c0_i32, %c0_i32_0 : i32, i32
  }
  func.func @transform_5(%arg0: i32, %arg1: i32) -> (i32, i32, i32) {
    %c0_i32 = arith.constant 0 : i32
    %c0_i32_0 = arith.constant 0 : i32
    %c0_i32_1 = arith.constant 0 : i32
    return %arg0, %c0_i32, %c0_i32_0 : i32, i32, i32
  }
}

</mosaic_0001>

<bundles_post_ra>
// kernel: tpu_custom_call.1
= control target key start
LH: loop header
LB: loop body
LE: loop exit
PB: predicated region body
PF: predicated region fallthrough
CT: control target
= control target key end

     0   :  { %10 = vsyncpa [#allocation4], 0  ;;  %s2266_s0 = inlined_call_operand.hbm [shape: f32[2,8,16], index: 0, kind: input, shape index: {}]   ;;  %s2267_s1 = inlined_call_operand.hbm [shape: f32[3,1,16,32], index: 1, kind: input, shape index: {}]   ;;  %s2268_s2 = inlined_call_operand.vmem [shape: f32[3,1,1,32], index: 2, kind: input, shape index: {}]   ;;  %s2269_s3 = inlined_call_operand.hbm [shape: f32[1,32,32], index: 3, kind: input, shape index: {}]   ;;  %s2270_s4 = inlined_call_operand.vmem [shape: f32[1,32], index: 4, kind: input, shape index: {}]   ;;  %s2271_s5 = inlined_call_operand.hbm [shape: f32[2,8,32], index: 5, kind: output, shape index: {}]  }
   0x1   :  { %12 = vsyncpa [#allocation4 + $0x1], 0 }
   0x2   :  { %13 = vsyncpa [#allocation7], 0 }
   0x3   :  { %14 = vsyncpa [#allocation5], 0 }
   0x4   :  { %16 = vsyncpa [#allocation5 + $0x1], 0  ;;  %s1929_s18 = smov 0   ;;  %s1931_s19 = smov 0  }
   0x5   :  { %s1933_s20 = smov 0   ;;  %s1935_s21 = smov 0  }
   0x6   :  { %s1937_s22 = smov 0   ;;  %s1939_s23 = smov 0  }
   0x7 LB: > { %s1443_s24 = sadd.s32 4294967295, %s1882_s23   ;;  %s1444_s25 = sadd.s32 4294967294, %s1882_s23   ;;  %s1882_s23 = sphi %s1939_s23, %s22_s23   ;;  %s1878_s22 = sphi %s1937_s22, %s2293_s22   ;;  %s1874_s21 = sphi %s1935_s21, %s2292_s21   ;;  %s1870_s20 = sphi %s1933_s20, %s2291_s20   ;;  %s1866_s19 = sphi %s1931_s19, %s2290_s19   ;;  %s1862_s18 = sphi %s1929_s18, %s2289_s18  }
   0x8   : > { %p54_p0 = scmp.ne.s32.totalorder %s1866_s19, %s1862_s18  ;;  %p1963_p1 = scmp.eq.s32.totalorder %s1443_s24, 0 }
   0x9   : > { %p1967_p2 = scmp.eq.s32.totalorder %s1443_s24, 1  ;;  %p178_p3 = scmp.eq.s32.totalorder %s1444_s25, 1 }
   0xa   : > { %s2276_s26 = scalar_select %p1963_p1, 1, 0 }
   0xb   : > { %p1973_p4 = por %p1963_p1, %p54_p0  ;;  %p1445_p5 = scmp.ge.s32.totalorder %s1882_s23, 1 }
   0xc   : > { %p1978_p6 = por %p178_p3, %p54_p0  ;;  %p185_p7 = scmp.lt.s32.totalorder %s1882_s23, 3 }
   0xd   : > { %s2278_s28 = scalar_select %p1973_p4, 1, 0 }
   0xe   : > { %s2279_s29 = scalar_select %p1978_p6, 1, 0 }
   0xf   : > { %p1983_p8 = pnand %p1445_p5, %p185_p7  ;;  %s1884_s6 = smov [#allocation6]  }
  0x10   : > { %s200_s7 = sshll.u32 %s1884_s6, 4  ;;  %s1885_s9 = smov [#allocation8]   ;;  %s1987_s7 = int_to_ptr.vmem [resolvable:$true] %s200_s7 }
  0x11   : > { %p1612_p9 = pneg %p1983_p8  ;;  %s219_s10 = sshll.u32 %s1885_s9, 4  ;;  %s1998_s10 = int_to_ptr.vmem [resolvable:$true] %s219_s10 }
  0x12   : > { %s1710_s13 = scalar_lea.hbm %s2267_s1, 768 }
  0x13   : > { %p1994_p11 = pnand %p1612_p9, %p1963_p1  ;;  %p1711_p12 = scmp.ne.s32.totalorder %s2267_s1, %s1710_s13 }
  0x14   : > { %p1717_p5 = scmp.lt.u32.totalorder %s1710_s13, %s2267_s1 }
  0x15   : > { %p1712_p13 = pneg %p1994_p11 }
  0x17   : > { %p1713_p0 = pnand %p1712_p13, %p1711_p12 }
  0x19   : > { %p1714_p3 = pneg %p1713_p0 }
  0x1b   : > { %p1719_p7 = pnand %p1717_p5, %p1714_p3 }
  0x1d   : > { %1722 = shalt.err (!%p1719_p7)
}
  0x1e   : > { %s1723_s24 = scalar_lea.vmem %s1987_s7, 768  ;;  %p1731_p1 = scmp.lt.s32.totalorder %s1987_s7, %s1987_s7 }
  0x1f   : > { %p1724_p9 = scmp.ne.s32.totalorder %s1987_s7, %s1723_s24  ;;  %p1732_p12 = scmp.lt.s32.totalorder %s1723_s24, %s1723_s24 }
  0x21   : > { %p1726_p10 = pnand %p1724_p9, %p1712_p13  ;;  %p1733_p0 = por %p1732_p12, %p1731_p1 }
  0x23   : > { %p1727_p6 = pneg %p1726_p10 }
  0x25   : > { %p1734_p4 = pnand %p1733_p0, %p1727_p6 }
  0x27   : > { %1737 = shalt.err (!%p1734_p4)
}
  0x28   : > { %s1886_s25 = smov 128   ;;  %s1887_s6 = smov 8  }
  0x29   : > { %1615 = dma.hbm_to_vmem [thread:$0]  (!%p1994_p11), %s2267_s1, 768, %s1987_s7, [#allocation7], %s1886_s25, %s1886_s25, %s1887_s6  }
  0x2a   : > { %s1738_s14 = scalar_lea.hbm %s2269_s3, 512 }
  0x2b   : > { %p1739_p1 = scmp.ne.s32.totalorder %s2269_s3, %s1738_s14  ;;  %p1745_p10 = scmp.lt.u32.totalorder %s1738_s14, %s2269_s3 }
  0x2d   : > { %p1741_p4 = pnand %p1739_p1, %p1712_p13 }
  0x2f   : > { %p1742_p6 = pneg %p1741_p4 }
  0x31   : > { %p1747_p3 = pnand %p1745_p10, %p1742_p6 }
  0x33   : > { %1750 = shalt.err (!%p1747_p3)
}
  0x34   : > { %s1751_s7 = scalar_lea.vmem %s1998_s10, 512  ;;  %p1759_p12 = scmp.lt.s32.totalorder %s1998_s10, %s1998_s10 }
  0x35   : > { %p1752_p5 = scmp.ne.s32.totalorder %s1998_s10, %s1751_s7  ;;  %p1760_p0 = scmp.lt.s32.totalorder %s1751_s7, %s1751_s7 }
  0x37   : > { %p1754_p7 = pnand %p1752_p5, %p1712_p13  ;;  %p1761_p1 = por %p1760_p0, %p1759_p12 }
  0x39   : > { %p1755_p9 = pneg %p1754_p7 }
  0x3b   : > { %p1762_p4 = pnand %p1761_p1, %p1755_p9 }
  0x3d   : > { %1765 = shalt.err (!%p1762_p4)
}
  0x3e   : > { %1618 = dma.hbm_to_vmem [thread:$0]  (!%p1994_p11), %s2269_s3, 512, %s1998_s10, [#allocation7], %s1886_s25, %s1886_s25, %s1887_s6  }
  0x3f   : > { %s34_s12 = sadd.s32 1, %s1878_s22  ;;  %s41_s13 = sadd.s32 1, %s1870_s20 }
  0x40   : > { %p36_p13 = scmp.ge.s32.totalorder %s34_s12, 2  ;;  %p48_p6 = scmp.ne.s32.totalorder %s1870_s20, %s1866_s19 }
  0x41   : > { %p49_p10 = scmp.eq.s32.totalorder %s1882_s23, 0  ;;  %p1629_p3 = scmp.lt.s32.totalorder %s1882_s23, 2 }
  0x42   : > { %s2295_s12 = smov (%p36_p13, %s34_s12), 0  ;;  %p2062_p7 = por %p1967_p2, %p48_p6 }
  0x43   : > { %p50_p5 = por %p49_p10, %p48_p6  ;;  %s38_s14 = ssub.s32 %s1878_s22, %s2295_s12 }
  0x44   : > { %s2282_s8 = scalar_select %p2062_p7, 1, 0 }
  0x45   : > { %s236_s15 = sand.u32 1, %s1870_s20   ;;  %p39_p9 = scmp.eq.s32.totalorder %s38_s14, 0 }
  0x46   : > { %s1450_s10 = sshll.u32 %s236_s15, 3  ;;  %s1451_s25 = sshll.u32 %s1878_s22, 7 }
  0x47   : > { %s2071_s6 = scalar_select %p39_p9, %s1870_s20, %s41_s13  }
  0x48   : > { %s2076_s24 = scalar_lea.hbm %s2266_s0, %s1451_s25  ;;  %s240_s27 = scalar_lea.vmem [#allocation3], %s1450_s10 }
  0x49   : > { %s247_s7 = sshll.u32 %s240_s27, 4  ;;  %p2080_p2 = pnand %p1629_p3, %p50_p5  ;;  %s2084_s7 = int_to_ptr.vmem [resolvable:$true] %s247_s7 }
  0x4a   : > { %s237_s11 = scalar_lea.sflag [#allocation4], %s236_s15  ;;  %s1766_s13 = scalar_lea.hbm %s2076_s24, 128 }
  0x4b   : > { %p1767_p11 = scmp.ne.s32.totalorder %s2076_s24, %s1766_s13  ;;  %p1768_p12 = pneg %p2080_p2 }
  0x4c   : > { %s1771_s25 = scalar_lea.hbm %s2266_s0, 256  ;;  %p1772_p4 = scmp.lt.u32.totalorder %s2076_s24, %s2266_s0 }
  0x4d   : > { %p1769_p0 = pnand %p1768_p12, %p1767_p11  ;;  %p1773_p13 = scmp.lt.u32.totalorder %s1771_s25, %s1766_s13 }
  0x4e   : > { %p1775_p10 = scmp.lt.u32.totalorder %s1766_s13, %s2076_s24 }
  0x4f   : > { %p1770_p1 = pneg %p1769_p0  ;;  %p1774_p6 = por %p1773_p13, %p1772_p4 }
  0x51   : > { %p1776_p3 = por %p1775_p10, %p1774_p6 }
  0x53   : > { %p1777_p5 = pnand %p1776_p3, %p1770_p1 }
  0x55   : > { %1780 = shalt.err (!%p1777_p5)
}
  0x56   : > { %s1781_s15 = scalar_lea.vmem %s2084_s7, 128  ;;  %s1888_s27 = smov [#allocation3]  }
  0x57   : > { %p1782_p9 = scmp.ne.s32.totalorder %s2084_s7, %s1781_s15  ;;  %s1786_s14 = sshll.u32 %s1888_s27, 4  ;;  %s1787_s14 = int_to_ptr.vmem [resolvable:$false] %s1786_s14 }
  0x58   : > { %s1788_s10 = scalar_lea.vmem %s1787_s14, 256  ;;  %p1789_p7 = scmp.lt.s32.totalorder %s2084_s7, %s1787_s14 }
  0x59   : > { %p1784_p11 = pnand %p1782_p9, %p1768_p12  ;;  %p1790_p4 = scmp.lt.s32.totalorder %s1788_s10, %s1781_s15 }
  0x5b   : > { %p1785_p0 = pneg %p1784_p11  ;;  %p1791_p13 = por %p1790_p4, %p1789_p7 }
  0x5d   : > { %p1792_p6 = pnand %p1791_p13, %p1785_p0 }
  0x5f   : > { %1795 = shalt.err (!%p1792_p6)
}
  0x60   : > { %1622 = dma.hbm_to_vmem [thread:$0]  (!%p2080_p2), %s2076_s24, 128, %s2084_s7, %s237_s11  }
  0x61   : > { %256 = sbr.rel (%p1983_p8) target bundleno = 1393 (0x571), region = 40  ;;  %s2114_s13 = sand.u32 (!%p1983_p8), 1, %s1866_s19  }
  0x62   : > { %s1453_s25 = sshll.u32 (!%p1983_p8), %s2114_s13, 3  ;;  %s259_s16 = scalar_lea.sflag (!%p1983_p8), [#allocation4], %s2114_s13 }
  0x63   : > { %s262_s17 = scalar_lea.vmem (!%p1983_p8), [#allocation3], %s1453_s25  ;;  %p2284_p7 = scmp.ne.s32.totalorder (!%p1983_p8), %s2278_s28, 0 }
  0x68   : > { %1849 = dma.done.wait (%p2284_p7), %s259_s16, 128  }
  0x69   : > { %1851 = vsyncadd (%p2284_p7), %s259_s16, 4294967168  ;;  %p2285_p2 = scmp.ne.s32.totalorder %s2276_s26, 0 }
  0x6b   : > { %1853 = dma.done.wait (%p2285_p2), [#allocation7], 1280  }
  0x6c   : > { %1855 = vsyncadd (%p2285_p2), [#allocation7], 4294966016  ;;  %v1889_v0 = vmov 0.0|0.0   ;;  %vm1890_vm0 = vmmov 0   ;;  %v1891_v1 = vmov 0.0   ;;  %v307_v2 = vld [vmem:[#allocation6 + $0x10] sm:$0xff] }
  0x6d   : > { %1588 = vmatprep.subr.bf16.mxu1 %v1889_v0  ;;  %1585 = vmatprep.subr.bf16.mxu0 %v1889_v0  ;;  %v308_v3 = vld [vmem:[#allocation6 + $0x18] sm:$0xff]  ;;  %v304_v4 = vld [vmem:[#allocation6] sm:$0xff]  ;;  %v305_v6 = vld [vmem:[#allocation6 + $0x8] sm:$0xff]  ;;  %vm323_vm1 = vcmask 130048   ;;  %vm549_vm2 = vcmask 64512   ;;  %s1892_s7 = smov 112  }
  0x6e   : > { %1524 = vmatprep.mubr.msk.f32.mxu1 %vm1890_vm0, %v1891_v1  ;;  %1517 = vmatprep.mubr.msk.f32.mxu0 %vm1890_vm0, %v1891_v1  ;;  %v1589_v5 = vpack.c.bf16 %v308_v3, %v307_v2  ;;  %v1586_v7 = vpack.c.bf16 %v305_v6, %v304_v4  ;;  %v303_v8 = vld [vmem:[%s262_s17] sm:$0xff]  ;;  %v310_v9 = vld [vmem:[#allocation6 + $0x20] sm:$0xff]  ;;  %v311_v10 = vld [vmem:[#allocation6 + $0x28] sm:$0xff]  ;;  %s1893_s9 = smov 120   ;;  %s1894_s11 = smov 104   ;;  %vm1220_vm3 = vcmask 195584  }
  0x6f   : > { %v1592_v11 = vpack.c.bf16 %v311_v10, %v310_v9  ;;  %v1461_v12 = vld [vmem:[%s2268_s2 + $0x1] ss:$0 sm:$0xff]  ;;  %v1459_v14 = vld [vmem:[%s2268_s2] ss:$0 sm:$0xff]  ;;  %v1463_v20 = vld [vmem:[%s2268_s2 + $0x2] ss:$0 sm:$0xff] }
  0x70   : > { %1590 = vmatpush3.bf16.msra.mxu1 %v1589_v5  ;;  %1587 = vmatpush3.bf16.msra.mxu0 %v1586_v7  ;;  %v1232_v9 = vld [vmem:[#allocation8 + $0x8] sm:$0xff]  ;;  %s1895_s14 = smov 8   ;;  %s1896_s10 = smov 16   ;;  %vm1224_vm4 = vcmask 261120  }
  0x71   : > { %1534 = vmatprep.subr.mxu1 %v1891_v1  ;;  %1591 = vmatprep.subr.bf16.mxu0 %v1889_v0  ;;  %s1897_s16 = smov 24   ;;  %s1480_s28 = sshll.u32 %s1874_s21, 7 }
  0x72   : > { %s299_s30 = scalar_lea.vmem [#allocation9], %s1453_s25  ;;  %s1317_s15 = scalar_lea.sflag [#allocation5], %s2114_s13 }
  0x73   : > { %1525 = vmatmul.mubr.msk.f32.vlgmr.msra.gmra.mrb[0].mxu1 %vm323_vm1, %v303_v8  ;;  %1518 = vmatmul.mubr.msk.f32.vlgmr.msra.gmra.mrb[0].mxu0 %vm323_vm1, %v303_v8  ;;  %s1330_s24 = sshll.u32 %s299_s30, 4  ;;  %p2286_p12 = scmp.ne.s32.totalorder %s2282_s8, 0  ;;  %s2218_s24 = int_to_ptr.vmem [resolvable:$true] %s1330_s24 }
  0x74   : > { %1536 = vmatprep.mubr.msk.f32.mxu1 %vm1890_vm0, %v1891_v1  ;;  %1531 = vmatprep.mubr.msk.f32.mxu0 %vm1890_vm0, %v1891_v1  ;;  %s1796_s21 = scalar_lea.vmem %s2218_s24, 128  ;;  %s1898_s25 = smov [#allocation9]  }
  0x75   : > { %1593 = vmatpush3.bf16.msra.mxu0 %v1592_v11  ;;  %v1233_v11 = vld [vmem:[#allocation8 + $0x10] sm:$0xff]  ;;  %p1797_p8 = scmp.ne.s32.totalorder %s2218_s24, %s1796_s21  ;;  %s1800_s27 = sshll.u32 %s1898_s25, 4  ;;  %s1801_s27 = int_to_ptr.vmem [resolvable:$false] %s1800_s27 }
  0x76   : > { %1539 = vmatprep.subr.mxu0 %v1891_v1  ;;  %p1803_p3 = scmp.lt.s32.totalorder %s2218_s24, %s1801_s27 }
  0x77   : > { %p1798_p1 = pnand %p1797_p8, %p2286_p12 }
  0x78   : > { %1532 = vmatmul.mubr.msk.f32.vlgmr.msra.gmra.mrb[2].mxu0 %vm323_vm1, %v303_v8  ;;  %v1231_v8 = vld [vmem:[#allocation8] sm:$0xff] }
  0x79   : > { %1541 = vmatprep.mubr.msk.f32.mxu0 %vm1890_vm0, %v1891_v1  ;;  %v1595_v10 = vpack.c.bf16 %v1232_v9, %v1231_v8  ;;  %p1799_p10 = pneg %p1798_p1 }
 0x146   : > { %v469_v13 = vpop.f32.mrb[0].mxu1  ;;  %v393_v17 = vpop.f32.mrb[0].mxu0 }
 0x147   : > { %v470_v15 = vadd.f32 %v1461_v12, %v469_v13  ;;  %v1526_v16 = vpop.f32.mrb[1].mxu1  ;;  %v1519_v18 = vpop.f32.mrb[1].mxu0  ;;  %v394_v19 = vadd.f32 %v1459_v14, %v393_v17  ;;  %v1234_v12 = vld [vmem:[#allocation8 + $0x18] sm:$0xff] }
 0x148   : > { %v1598_v16 = vpack.c.bf16 %v1234_v12, %v1233_v11 }
 0x149   : > { %878 = vrot.lane.b32.xlu1 %v470_v15, %s1892_s7  ;;  %712 = vrot.lane.b32.xlu0 %v470_v15, %s1893_s9 }
 0x14a   : > { %1535 = vmatpush3.xpose.msk.msra.mxu1 %vm549_vm2, %v470_v15 }
 0x14b   : > { %1544 = vmatprep.subr.mxu1 %v1891_v1  ;;  %v545_v21 = vpop.f32.mrb[2].mxu0 }
 0x14c   : > { %v546_v22 = vadd.f32 %v1463_v20, %v545_v21  ;;  %v1533_v23 = vpop.f32.mrb[3].mxu0 }
 0x14d   : > { %1537 = vmatmul.mubr.msk.f32.vlgmr.msra.gmra.mrb[2].mxu1 %vm549_vm2, %v394_v19  ;;  %876 = vrot.lane.b32.xlu1 %v394_v19, %s1892_s7 }
 0x14e   : > { %710 = vrot.lane.b32.xlu0 %v394_v19, %s1893_s9  ;;  %1546 = vmatprep.mubr.msk.f32.mxu1 %vm1890_vm0, %v1891_v1 }
 0x14f   : > { %1540 = vmatpush3.msra.mxu0 %v546_v22 }
 0x150   : > { %1549 = vmatprep.subr.mxu0 %v1891_v1 }
 0x151   : > { %1041 = vrot.lane.b32.xlu1 %v394_v19, %s1894_s11 }
 0x152   : > { %1043 = vrot.lane.b32.xlu0 %v470_v15, %s1894_s11 }
 0x155   : > { %798 = vrot.lane.b32.xlu1 %v546_v22, %s1893_s9 }
 0x1bb   : > { %v713_v24 = vpop.permute.xlu0 %712  ;;  %v879_v25 = vpop.permute.xlu1 %878 }
 0x1bc   : > { %1545 = vmatpush3.xpose.msk.msra.mxu1 %vm549_vm2, %v713_v24 }
 0x1bd   : > { %1554 = vmatprep.subr.mxu1 %v1891_v1 }
 0x1bf   : > { %v877_v27 = vpop.permute.xlu1 %876 }
 0x1c0   : > { %v711_v26 = vpop.permute.xlu0 %710 }
 0x1c1   : > { %1547 = vmatmul.mubr.msk.f32.vlgmr.msra.gmra.mrb[4].mxu1 %vm549_vm2, %v711_v26 }
 0x1c2   : > { %1555 = vmatpush3.xpose.msk.msra.mxu1 %vm549_vm2, %v879_v25  ;;  %1556 = vmatprep.mubr.msk.f32.mxu1 %vm1890_vm0, %v1891_v1 }
 0x1c3   : > { %1564 = vmatprep.subr.mxu1 %v1891_v1  ;;  %v1042_v29 = vpop.permute.xlu1 %1041 }
 0x1c4   : > { %v1044_v28 = vpop.permute.xlu0 %1043 }
 0x1c5   : > { %1557 = vmatmul.mubr.msk.f32.vlgmr.msra.gmra.mrb[6].mxu1 %vm549_vm2, %v877_v27 }
 0x1c6   : > { %1565 = vmatpush3.xpose.msk.msra.mxu1 %vm549_vm2, %v1044_v28  ;;  %1566 = vmatprep.mubr.msk.f32.mxu1 %vm1890_vm0, %v1891_v1 }
 0x1c7   : > { %1594 = vmatprep.subr.bf16.mxu1 %v1889_v0  ;;  %v799_v45 = vpop.permute.xlu1 %798 }
 0x1c9   : > { %1567 = vmatmul.mubr.msk.f32.vlgmr.msra.gmra.mrb[8].mxu1 %vm549_vm2, %v1042_v29 }
 0x1ca   : > { %1582 = vmatprep.mubr.msk.f32.mxu1 %vm1890_vm0, %v1891_v1  ;;  %1596 = vmatpush3.bf16.msra.mxu1 %v1595_v10 }
 0x1cb   : > { %1597 = vmatprep.subr.bf16.mxu1 %v1889_v0 }
 0x1ce   : > { %1599 = vmatpush3.bf16.msra.mxu1 %v1598_v16 }
 0x220   : > { %v622_v30 = vpop.f32.mrb[2].mxu1 }
 0x221   : > { %v1538_v31 = vpop.f32.mrb[3].mxu1  ;;  %v626_v32 = vsel %vm549_vm2, %v622_v30, -inf }
 0x222   : > { %627 = vmax.xlane.f32.xlu0 %v626_v32 }
 0x294   : > { %v784_v33 = vpop.f32.mrb[4].mxu1 }
 0x295   : > { %v1548_v34 = vpop.f32.mrb[5].mxu1  ;;  %v788_v35 = vsel %vm549_vm2, %v784_v33, -inf }
 0x296   : > { %789 = vmax.xlane.f32.xlu1 %v788_v35  ;;  %v1477_v34 = vld [vmem:[%s2270_s4] ss:$0 sm:$0xff] }
 0x298   : > { %v950_v36 = vpop.f32.mrb[6].mxu1 }
 0x299   : > { %v1558_v37 = vpop.f32.mrb[7].mxu1  ;;  %v954_v38 = vsel %vm549_vm2, %v950_v36, -inf }
 0x29a   : > { %955 = vmax.xlane.f32.xlu0 %v954_v38 }
 0x29c   : > { %v1115_v39 = vpop.f32.mrb[8].mxu1 }
 0x29d   : > { %v1568_v40 = vpop.f32.mrb[9].mxu1  ;;  %v1119_v41 = vsel %vm549_vm2, %v1115_v39, -inf }
 0x29e   : > { %1120 = vmax.xlane.f32.xlu0 %v1119_v41 }
 0x2a7   : > { %1128 = vrot.lane.b32.xlu1 %v546_v22, %s1894_s11  ;;  %s2216_s11 = scalar_lea.hbm %s2271_s5, %s1480_s28 }
 0x2af   : > { %v628_v42 = vpop.xlane.xlu0 %627 }
 0x2b0   : > { %v629_v43 = vsub.f32 %v622_v30, %v628_v42 }
 0x2b2   : > { %v630_v44 = vmul.f32 1.442695, %v629_v43 }
 0x2b4   : > { %1694 = vpow2.f32 %v630_v44  ;;  %963 = vrot.lane.b32.xlu0 %v546_v22, %s1892_s7 }
 0x2be   : > { %v1695_v46 = vpop.eup %1694 }
 0x2bf   : > { %1542 = vmatmul.mubr.msk.f32.vlgmr.msra.gmra.mrb[4].mxu0 %vm549_vm2, %v1695_v46  ;;  %v632_v62 = vsel %vm549_vm2, %v1695_v46, 0.0 }
 0x2c0   : > { %1550 = vmatpush3.msra.mxu0 %v799_v45  ;;  %1551 = vmatprep.mubr.msk.f32.mxu0 %vm1890_vm0, %v1891_v1 }
 0x2c1   : > { %1559 = vmatprep.subr.mxu0 %v1891_v1 }
 0x323   : > { %v790_v47 = vpop.xlane.xlu1 %789 }
 0x324   : > { %v791_v48 = vsub.f32 %v784_v33, %v790_v47 }
 0x326   : > { %v792_v49 = vmul.f32 1.442695, %v791_v48 }
 0x327   : > { %v956_v50 = vpop.xlane.xlu0 %955  ;;  %v1129_v60 = vpop.permute.xlu1 %1128 }
 0x328   : > { %1696 = vpow2.f32 %v792_v49  ;;  %v957_v51 = vsub.f32 %v950_v36, %v956_v50 }
 0x32a   : > { %v958_v52 = vmul.f32 1.442695, %v957_v51 }
 0x32b   : > { %v1121_v53 = vpop.xlane.xlu0 %1120 }
 0x32c   : > { %1698 = vpow2.f32 %v958_v52  ;;  %v1122_v54 = vsub.f32 %v1115_v39, %v1121_v53 }
 0x32e   : > { %v1123_v55 = vmul.f32 1.442695, %v1122_v54 }
 0x32f   : > { %v964_v57 = vpop.permute.xlu0 %963 }
 0x330   : > { %1700 = vpow2.f32 %v1123_v55 }
 0x332   : > { %v1697_v56 = vpop.eup %1696 }
 0x333   : > { %1552 = vmatmul.mubr.msk.f32.vlgmr.msra.gmra.mrb[6].mxu0 %vm549_vm2, %v1697_v56  ;;  %v794_v58 = vsel %vm549_vm2, %v1697_v56, 0.0 }
 0x334   : > { %1560 = vmatpush3.msra.mxu0 %v964_v57  ;;  %795 = vadd.xlane.f32.xlu1 %v794_v58 }
 0x335   : > { %1561 = vmatprep.mubr.msk.f32.mxu0 %vm1890_vm0, %v1891_v1  ;;  %1569 = vmatprep.subr.mxu0 %v1891_v1 }
 0x336   : > { %v1699_v59 = vpop.eup %1698 }
 0x337   : > { %1562 = vmatmul.mubr.msk.f32.vlgmr.msra.gmra.mrb[8].mxu0 %vm549_vm2, %v1699_v59  ;;  %v960_v61 = vsel %vm549_vm2, %v1699_v59, 0.0 }
 0x338   : > { %1570 = vmatpush3.msra.mxu0 %v1129_v60  ;;  %961 = vadd.xlane.f32.xlu0 %v960_v61 }
 0x339   : > { %633 = vadd.xlane.f32.xlu1 %v632_v62  ;;  %1571 = vmatprep.mubr.msk.f32.mxu0 %vm1890_vm0, %v1891_v1 }
 0x33a   : > { %v1701_v63 = vpop.eup %1700 }
 0x33b   : > { %1572 = vmatmul.mubr.msk.f32.vlgmr.msra.gmra.mrb[10].mxu0 %vm549_vm2, %v1701_v63  ;;  %v1125_v2 = vsel %vm549_vm2, %v1701_v63, 0.0 }
 0x33c   : > { %1126 = vadd.xlane.f32.xlu0 %v1125_v2 }
 0x392   : > { %v704_v3 = vpop.f32.mrb[4].mxu0 }
 0x393   : > { %v1543_v4 = vpop.f32.mrb[5].mxu0 }
 0x3c1   : > { %v796_v5 = vpop.xlane.xlu1 %795 }
 0x3c2   : > { %1702 = vrcp.f32 %v796_v5 }
 0x3c5   : > { %v962_v6 = vpop.xlane.xlu0 %961 }
 0x3c6   : > { %1704 = vrcp.f32 %v962_v6  ;;  %v634_v25 = vpop.xlane.xlu1 %633 }
 0x3c9   : > { %v1127_v7 = vpop.xlane.xlu0 %1126 }
 0x3ca   : > { %1706 = vrcp.f32 %v1127_v7 }
 0x3cb   : > { %1708 = vrcp.f32 %v634_v25 }
 0x3cc   : > { %v1703_v1 = vpop.eup %1702 }
 0x3d0   : > { %v1705_v17 = vpop.eup %1704 }
 0x3d4   : > { %v1707_v21 = vpop.eup %1706 }
 0x3d5   : > { %v1709_v0 = vpop.eup %1708 }
 0x3d6   : > { %v709_v28 = vmul.f32 %v1709_v0, %v704_v3 }
 0x406   : > { %v870_v13 = vpop.f32.mrb[6].mxu0 }
 0x407   : > { %v875_v14 = vmul.f32 %v1703_v1, %v870_v13  ;;  %v1553_v15 = vpop.f32.mrb[7].mxu0 }
 0x409   : > { %1207 = vrot.lane.b32.xlu0 %v875_v14, %s1895_s14  ;;  %s1802_s14 = scalar_lea.vmem %s1801_s27, 256 }
 0x40a   : > { %v1035_v18 = vpop.f32.mrb[8].mxu0  ;;  %p1804_p5 = scmp.lt.s32.totalorder %s1802_s14, %s1796_s21 }
 0x40b   : > { %v1040_v19 = vmul.f32 %v1705_v17, %v1035_v18  ;;  %v1563_v20 = vpop.f32.mrb[9].mxu0 }
 0x40c   : > { %p1805_p9 = por %p1804_p5, %p1803_p3 }
 0x40d   : > { %1211 = vrot.lane.b32.xlu1 %v1040_v19, %s1896_s10 }
 0x40e   : > { %v1200_v22 = vpop.f32.mrb[10].mxu0  ;;  %p1806_p11 = pnand %p1805_p9, %p1799_p10 }
 0x40f   : > { %v1205_v23 = vmul.f32 %v1707_v21, %v1200_v22  ;;  %v1573_v24 = vpop.f32.mrb[11].mxu0 }
 0x411   : > { %1215 = vrot.lane.b32.xlu1 %v1205_v23, %s1897_s16 }
 0x47b   : > { %v1208_v26 = vpop.permute.xlu0 %1207 }
 0x47c   : > { %v1218_v29 = vsel %vm549_vm2, %v709_v28, %v1208_v26 }
 0x47f   : > { %v1212_v27 = vpop.permute.xlu1 %1211 }
 0x480   : > { %v1219_v30 = vsel %vm323_vm1, %v1218_v29, %v1212_v27 }
 0x483   : > { %v1216_v31 = vpop.permute.xlu1 %1215 }
 0x484   : > { %v1221_v32 = vsel %vm1220_vm3, %v1219_v30, %v1216_v31 }
 0x485   : > { %1225 = vst.msk [vmem:[#allocation2] sm:$0xff] %vm1224_vm4, %v1221_v32 }
 0x48c   : > { %v1230_v33 = vld [vmem:[#allocation2] sm:$0xff] }
 0x48d   : > { %1583 = vmatmul.mubr.msk.f32.vlgmr.msra.gmra.mrb[10].mxu1 %vm1224_vm4, %v1230_v33 }
 0x560   : > { %v1311_v35 = vpop.f32.mrb[10].mxu1 }
 0x561   : > { %v1312_v36 = vadd.f32 %v1477_v34, %v1311_v35  ;;  %v1584_v37 = vpop.f32.mrb[11].mxu1 }
 0x563   : > { %1315 = vst.msk [vmem:[%s299_s30] sm:$0xff] %vm1224_vm4, %v1312_v36 }
 0x564   : > { %1809 = shalt.err (!%p1806_p11)
}
 0x565   : > { %s1810_s13 = scalar_lea.hbm %s2216_s11, 128  ;;  %s1814_s17 = scalar_lea.hbm %s2271_s5, 256 }
 0x566   : > { %p1811_p0 = scmp.ne.s32.totalorder %s2216_s11, %s1810_s13  ;;  %p1815_p6 = scmp.lt.u32.totalorder %s2216_s11, %s2271_s5 }
 0x567   : > { %p1816_p7 = scmp.lt.u32.totalorder %s1814_s17, %s1810_s13  ;;  %p1818_p8 = scmp.lt.u32.totalorder %s1810_s13, %s2216_s11 }
 0x568   : > { %p1812_p4 = pnand %p1811_p0, %p2286_p12 }
 0x569   : > { %p1817_p2 = por %p1816_p7, %p1815_p6 }
 0x56a   : > { %p1813_p13 = pneg %p1812_p4 }
 0x56b   : > { %p1819_p1 = por %p1818_p8, %p1817_p2 }
 0x56d   : > { %p1820_p10 = pnand %p1819_p1, %p1813_p13 }
 0x56f   : > { %1823 = shalt.err (!%p1820_p10)
}
 0x570   : > { %1610 = dma.vmem_to_hbm [thread:$0]  (%p2286_p12), %s2218_s24, 128, %s2216_s11, %s1317_s15  }
 0x571 PF: > { %s1342_s30 = sand.u32 1, %s1862_s18   ;;  %p2287_p3 = scmp.ne.s32.totalorder %s2279_s29, 0 }
 0x572   : > { %p2288_p5 = scmp.ge.s32.totalorder %s1882_s23, 2  ;;  %s1343_s7 = scalar_lea.sflag [#allocation5], %s1342_s30 }
 0x574   : > { %p1624_p9 = pnand %p2288_p5, %p2287_p3 }
 0x576   : > { %1857 = dma.done.wait (!%p1624_p9), %s1343_s7, 128  }
 0x577   : > { %1859 = vsyncadd (!%p1624_p9), %s1343_s7, 4294967168  ;;  %s22_s23 = sadd.s32 1, %s1882_s23   ;;  %s2289_s18 = smov %s1866_s19 }
 0x578   : > { %p19_p11 = scmp.ge.s32.totalorder %s22_s23, 4   ;;  %s2290_s19 = smov %s1870_s20 }
 0x579   : > { %s2291_s20 = smov %s2071_s6  ;;  %s2292_s21 = smov %s1878_s22 }
 0x57a   : > { %s2293_s22 = smov %s2295_s12  ;;  %21 = sbr.rel (!%p19_p11) target bundleno = 7 (0x7), region = 106 }
 0x581   :  { %1348 = vsyncpa [#allocation4], 1 }
 0x582   :  { %1350 = vsyncpa [#allocation4 + $0x1], 1 }
 0x583   :  { %1351 = vsyncpa [#allocation7], 1 }
 0x584   :  { %1352 = vsyncpa [#allocation5], 1 }
 0x585   :  { %1354 = vsyncpa [#allocation5 + $0x1], 1 }

</bundles_post_ra>
